<compile_context>
chip_gen: v7x
topology: tpu7x:2x2x1
jax: 0.10.0
libtpu: 0.0.40
codegen_flags: <defaults>
</compile_context>

<pallas_src>
import jax
import jax.numpy as jnp
from jax.experimental import pallas as pl
from jax.experimental.pallas import tpu as pltpu

IN_FEATURES = 222
OUT_FEATURES = 6

# Default batch tile (rows). Multiple of 8 (sublane), sized so that the
# double-buffered x tile (TB * 256 lanes * 4 B * 2 buffers ~ 2 MiB at 1024)
# sits comfortably inside every generation's scoped-VMEM default while
# amortizing the ~0.35 us per-grid-step overhead.
DEFAULT_TB = 1024


def _round_up(n, m):
    return ((n + m - 1) // m) * m


def _genre_encoder_kernel(x_ref, w_ref, b_ref, o_ref):
    # MXU matmul with f32 accumulation, then fused bias + ReLU on the VPU.
    x = x_ref[...]                                           # (TB, 222)
    w = w_ref[...]                                           # (222, 6)  resident
    b = b_ref[...]                                           # (1, 6)    resident
    y = jnp.dot(x, w, preferred_element_type=jnp.float32)    # (TB, 6) f32
    y = y + b
    o_ref[...] = jnp.maximum(y, 0.0).astype(o_ref.dtype)


def genre_encoder_forward(x, weight, bias, *, tb=DEFAULT_TB):
    """x: (B, 222) f32; weight: (222, 6) f32; bias: (6,) f32 -> (B, 6) f32."""
    B = x.shape[0]
    bias2d = bias.reshape(1, OUT_FEATURES)

    # Tile size: multiple of 8, never larger than the (rounded-up) batch.
    tb = max(8, min(tb, _round_up(max(B, 1), 8)))
    padded_B = _round_up(B, tb)
    if padded_B != B:
        x = jnp.pad(x, ((0, padded_B - B), (0, 0)))

    grid = (padded_B // tb,)

    cost = pl.CostEstimate(
        flops=2 * padded_B * IN_FEATURES * OUT_FEATURES,
        bytes_accessed=(padded_B * IN_FEATURES * 4
                        + IN_FEATURES * OUT_FEATURES * 4
                        + padded_B * OUT_FEATURES * 4),
        transcendentals=0,
    )

    out = pl.pallas_call(
        _genre_encoder_kernel,
        out_shape=jax.ShapeDtypeStruct((padded_B, OUT_FEATURES), jnp.float32),
        grid=grid,
        in_specs=[
            # x: one batch tile per grid step (pipelined/double-buffered).
            pl.BlockSpec((tb, IN_FEATURES), lambda i: (i, 0)),
            # weight/bias: constant index_map -> stay resident, DMA'd once.
            pl.BlockSpec((IN_FEATURES, OUT_FEATURES), lambda i: (0, 0)),
            pl.BlockSpec((1, OUT_FEATURES), lambda i: (0, 0)),
        ],
        out_specs=pl.BlockSpec((tb, OUT_FEATURES), lambda i: (i, 0)),
        compiler_params=pltpu.CompilerParams(
            dimension_semantics=("parallel",),
        ),
        cost_estimate=cost,
    )(x, weight, bias2d)

    if padded_B != B:
        out = out[:B]
    return out


def init_params(key):
    """Deterministic init mirroring nn.Linear(222, 6) default (uniform +/- 1/sqrt(fan_in))."""
    kw, kb = jax.random.split(key)
    bound = 1.0 / jnp.sqrt(jnp.float32(IN_FEATURES))
    # Stored as (in, out) so the kernel computes x @ W directly.
    weight = jax.random.uniform(
        kw, (IN_FEATURES, OUT_FEATURES), jnp.float32, -bound, bound
    )
    bias = jax.random.uniform(kb, (OUT_FEATURES,), jnp.float32, -bound, bound)
    return weight, bias


if __name__ == "__main__":
    key = jax.random.PRNGKey(0)
    k_x, k_x2, k_p = jax.random.split(key, 3)

    weight, bias = init_params(k_p)

    # Small batch (single tile).
    B = 8
    x = jax.random.normal(k_x, (B, IN_FEATURES), jnp.float32)
    out = jax.block_until_ready(genre_encoder_forward(x, weight, bias))
    ref = jnp.maximum(x @ weight + bias, 0.0)
    assert out.shape == (B, OUT_FEATURES)
    assert jnp.allclose(out, ref, atol=1e-5, rtol=1e-5)

    # Larger batch exercising the multi-step grid + remainder padding path.
    B2 = 300
    x2 = jax.random.normal(k_x2, (B2, IN_FEATURES), jnp.float32)
    out2 = jax.block_until_ready(genre_encoder_forward(x2, weight, bias, tb=128))
    ref2 = jnp.maximum(x2 @ weight + bias, 0.0)
    assert out2.shape == (B2, OUT_FEATURES)
    assert jnp.allclose(out2, ref2, atol=1e-5, rtol=1e-5)

    print("KERNEL_OK")
</pallas_src>

<mosaic_0001>
module attributes {stable_mosaic.version = 11 : i64} {
  func.func @_genre_encoder_kernel(%arg0: i32, %arg1: memref<8x222xf32, #tpu.memory_space<vmem>>, %arg2: memref<222x6xf32, #tpu.memory_space<vmem>>, %arg3: memref<1x6xf32, #tpu.memory_space<vmem>>, %arg4: memref<8x6xf32, #tpu.memory_space<vmem>>) attributes {dimension_semantics = [#tpu.dimension_semantics<parallel>], iteration_bounds = array<i64: 1>, scalar_prefetch = 0 : i64, scratch_operands = 0 : i64, tpu.core_type = #tpu.core_type<tc>, window_params = [{transform_indices = @transform_0, window_bounds = array<i64: 8, 222>}, {pipeline_mode = #tpu.pipeline_mode<synchronous>, transform_indices = @transform_1, window_bounds = array<i64: 222, 6>}, {pipeline_mode = #tpu.pipeline_mode<synchronous>, transform_indices = @transform_2, window_bounds = array<i64: 1, 6>}, {transform_indices = @transform_3, window_bounds = array<i64: 8, 6>}]} {
    %c0 = arith.constant 0 : index
    %c0_0 = arith.constant 0 : index
    %0 = vector.load %arg1[%c0, %c0_0] : memref<8x222xf32, #tpu.memory_space<vmem>>, vector<8x222xf32>
    %c0_1 = arith.constant 0 : index
    %c0_2 = arith.constant 0 : index
    %1 = vector.load %arg2[%c0_1, %c0_2] : memref<222x6xf32, #tpu.memory_space<vmem>>, vector<222x6xf32>
    %c0_3 = arith.constant 0 : index
    %c0_4 = arith.constant 0 : index
    %2 = vector.load %arg3[%c0_3, %c0_4] : memref<1x6xf32, #tpu.memory_space<vmem>>, vector<1x6xf32>
    %cst = arith.constant dense<0.000000e+00> : vector<8x6xf32>
    %3 = tpu.matmul %0, %1, %cst {dimension_numbers = #tpu.dot_dimension_numbers<[1], [0], [0], [1], [0, 0, 1, 1], [], []>} : vector<8x222xf32>, vector<222x6xf32>, vector<8x6xf32> -> vector<8x6xf32>
    %4 = vector.broadcast %2 : vector<1x6xf32> to vector<8x6xf32>
    %5 = arith.addf %3, %4 : vector<8x6xf32>
    %cst_5 = arith.constant 0.000000e+00 : f32
    %6 = vector.broadcast %cst_5 : f32 to vector<8x6xf32>
    %7 = arith.maximumf %5, %6 : vector<8x6xf32>
    %c0_6 = arith.constant 0 : index
    %c0_7 = arith.constant 0 : index
    %8 = vector.load %arg4[%c0_6, %c0_7] : memref<8x6xf32, #tpu.memory_space<vmem>>, vector<8x6xf32>
    tpu.vector_store %arg4[%c0_6, %c0_7], %7 {strides = array<i32>} : memref<8x6xf32, #tpu.memory_space<vmem>>, vector<8x6xf32>,
    return
  }
  func.func @transform_0(%arg0: i32) -> (i32, i32) {
    %c0_i32 = arith.constant 0 : i32
    %c0_i32_0 = arith.constant 0 : i32
    return %arg0, %c0_i32 : i32, i32
  }
  func.func @transform_1(%arg0: i32) -> (i32, i32) {
    %c0_i32 = arith.constant 0 : i32
    %c0_i32_0 = arith.constant 0 : i32
    %c0_i32_1 = arith.constant 0 : i32
    return %c0_i32, %c0_i32_0 : i32, i32
  }
  func.func @transform_2(%arg0: i32) -> (i32, i32) {
    %c0_i32 = arith.constant 0 : i32
    %c0_i32_0 = arith.constant 0 : i32
    %c0_i32_1 = arith.constant 0 : i32
    return %c0_i32, %c0_i32_0 : i32, i32
  }
  func.func @transform_3(%arg0: i32) -> (i32, i32) {
    %c0_i32 = arith.constant 0 : i32
    %c0_i32_0 = arith.constant 0 : i32
    return %arg0, %c0_i32 : i32, i32
  }
}

</mosaic_0001>

<bundles_post_ra>
// kernel: tpu_custom_call.1
= control target key start
LH: loop header
LB: loop body
LE: loop exit
PB: predicated region body
PF: predicated region fallthrough
CT: control target
= control target key end

     0   :  { %v220_v3 = vmov 0.0|0.0   ;;  %vm52_vm0 = vcmask 769024   ;;  %s362_s0 = inlined_call_operand.vmem [shape: f32[8,222], index: 0, kind: input, shape index: {}]   ;;  %s363_s1 = inlined_call_operand.vmem [shape: f32[222,6], index: 1, kind: input, shape index: {}]   ;;  %s364_s2 = inlined_call_operand.vmem [shape: f32[1,6], index: 2, kind: input, shape index: {}]   ;;  %s365_s3 = inlined_call_operand.hbm [shape: f32[8,6], index: 3, kind: output, shape index: {}]  }
   0x1   :  { %v17_v0 = vld [vmem:[%s363_s1] sm:$0xff]  ;;  %v18_v1 = vld [vmem:[%s363_s1 + $0x8] sm:$0xff]  ;;  %v19_v2 = vld [vmem:[%s363_s1 + $0x10] sm:$0xff]  ;;  %150 = vmatprep.subr.bf16.mxu0 %v220_v3 }
   0x2   :  { %v151_v4 = vpack.c.bf16 %v18_v1, %v17_v0  ;;  %v20_v5 = vld [vmem:[%s363_s1 + $0x18] sm:$0xff]  ;;  %v21_v7 = vld [vmem:[%s363_s1 + $0x20] sm:$0xff]  ;;  %v22_v8 = vld [vmem:[%s363_s1 + $0x28] sm:$0xff] }
   0x3   :  { %v154_v6 = vpack.c.bf16 %v20_v5, %v19_v2  ;;  %v157_v9 = vpack.c.bf16 %v22_v8, %v21_v7  ;;  %v23_v10 = vld [vmem:[%s363_s1 + $0x30] sm:$0xff]  ;;  %v24_v11 = vld [vmem:[%s363_s1 + $0x38] sm:$0xff]  ;;  %v16_v12 = vld [vmem:[%s362_s0 + $0x8] sm:$0xff] }
   0x4   :  { %152 = vmatpush1.bf16.msra.mxu0 %v151_v4  ;;  %149 = vmatprep.mubr.msk.f32.mxu0 %vm52_vm0, %v16_v12 }
   0x5   :  { %153 = vmatprep.subr.bf16.mxu0 %v220_v3 }
   0x8   :  { %155 = vmatpush1.bf16.msra.mxu0 %v154_v6 }
   0x9   :  { %156 = vmatprep.subr.bf16.mxu0 %v220_v3 }
   0xa   :  { %8 = vsyncpa [#allocation3], 0  ;;  %v160_v13 = vpack.c.bf16 %v24_v11, %v23_v10  ;;  %v25_v14 = vld [vmem:[%s363_s1 + $0x40] sm:$0xff]  ;;  %v26_v15 = vld [vmem:[%s363_s1 + $0x48] sm:$0xff]  ;;  %vm56_vm1 = vcmask 1045504   ;;  %vm221_vm2 = vmmov 1  }
   0xb   :  { %v163_v16 = vpack.c.bf16 %v26_v15, %v25_v14  ;;  %v27_v17 = vld [vmem:[%s363_s1 + $0x50] sm:$0xff]  ;;  %v28_v18 = vld [vmem:[%s363_s1 + $0x58] sm:$0xff]  ;;  %v29_v20 = vld [vmem:[%s363_s1 + $0x60] sm:$0xff]  ;;  %s222_s20 = smov [#allocation2]   ;;  %vm131_vm4 = vcmask 48128  }
   0xc   :  { %158 = vmatpush1.bf16.msra.mxu0 %v157_v9  ;;  %v166_v19 = vpack.c.bf16 %v28_v18, %v27_v17  ;;  %v30_v21 = vld [vmem:[%s363_s1 + $0x68] sm:$0xff]  ;;  %v31_v23 = vld [vmem:[%s363_s1 + $0x70] sm:$0xff]  ;;  %v32_v24 = vld [vmem:[%s363_s1 + $0x78] sm:$0xff] }
   0xd   :  { %159 = vmatprep.subr.bf16.mxu0 %v220_v3  ;;  %v169_v22 = vpack.c.bf16 %v30_v21, %v29_v20  ;;  %v172_v25 = vpack.c.bf16 %v32_v24, %v31_v23  ;;  %v33_v26 = vld [vmem:[%s363_s1 + $0x80] sm:$0xff]  ;;  %v34_v27 = vld [vmem:[%s363_s1 + $0x88] sm:$0xff]  ;;  %v35_v29 = vld [vmem:[%s363_s1 + $0x90] sm:$0xff] }
   0xe   :  { %v175_v28 = vpack.c.bf16 %v34_v27, %v33_v26  ;;  %v36_v30 = vld [vmem:[%s363_s1 + $0x98] sm:$0xff]  ;;  %v37_v32 = vld [vmem:[%s363_s1 + $0xa0] sm:$0xff]  ;;  %v38_v33 = vld [vmem:[%s363_s1 + $0xa8] sm:$0xff] }
   0xf   :  { %v178_v31 = vpack.c.bf16 %v36_v30, %v35_v29  ;;  %v181_v34 = vpack.c.bf16 %v38_v33, %v37_v32  ;;  %v39_v35 = vld [vmem:[%s363_s1 + $0xb0] sm:$0xff]  ;;  %v40_v36 = vld [vmem:[%s363_s1 + $0xb8] sm:$0xff]  ;;  %v41_v38 = vld [vmem:[%s363_s1 + $0xc0] sm:$0xff] }
  0x10   :  { %161 = vmatpush1.bf16.msra.mxu0 %v160_v13  ;;  %v184_v37 = vpack.c.bf16 %v40_v36, %v39_v35  ;;  %v42_v39 = vld [vmem:[%s363_s1 + $0xc8] sm:$0xff]  ;;  %v43_v41 = vld [vmem:[%s363_s1 + $0xd0] sm:$0xff]  ;;  %v44_v42 = vld [vmem:[%s363_s1 + $0xd8] sm:$0x3f]  ;;  %s139_s1 = sshll.u32 %s222_s20, 4  ;;  %s140_s1 = int_to_ptr.vmem [resolvable:$true] %s139_s1 }
  0x11   :  { %162 = vmatprep.subr.bf16.mxu0 %v220_v3  ;;  %v187_v40 = vpack.c.bf16 %v42_v39, %v41_v38  ;;  %v190_v43 = vpack.c.bf16 %v44_v42, %v43_v41  ;;  %vm191_vm3 = vmpackc.low %vm56_vm1, %vm221_vm2  ;;  %v15_v44 = vld [vmem:[%s362_s0] sm:$0xff]  ;;  %s196_s21 = scalar_lea.vmem %s140_s1, 128  ;;  %p201_p1 = scmp.lt.s32.totalorder %s140_s1, %s140_s1 }
  0x12   :  { %v147_v45 = vld [vmem:[%s364_s2] ss:$0 sm:$0xff]  ;;  %p197_p0 = scmp.ne.s32.totalorder %s140_s1, %s196_s21  ;;  %p202_p2 = scmp.lt.s32.totalorder %s196_s21, %s196_s21 }
  0x14   :  { %164 = vmatpush1.bf16.msra.mxu0 %v163_v16  ;;  %p203_p3 = por %p202_p2, %p201_p1 }
  0x15   :  { %165 = vmatprep.subr.bf16.mxu0 %v220_v3 }
  0x16   :  { %p204_p4 = pnand %p203_p3, %p197_p0 }
  0x18   :  { %167 = vmatpush1.bf16.msra.mxu0 %v166_v19 }
  0x19   :  { %168 = vmatprep.subr.bf16.mxu0 %v220_v3 }
  0x1c   :  { %170 = vmatpush1.bf16.msra.mxu0 %v169_v22 }
  0x1d   :  { %171 = vmatprep.subr.bf16.mxu0 %v220_v3 }
  0x20   :  { %173 = vmatpush1.bf16.msra.mxu0 %v172_v25 }
  0x21   :  { %174 = vmatprep.subr.bf16.mxu0 %v220_v3 }
  0x24   :  { %176 = vmatpush1.bf16.msra.mxu0 %v175_v28 }
  0x25   :  { %177 = vmatprep.subr.bf16.mxu0 %v220_v3 }
  0x28   :  { %179 = vmatpush1.bf16.msra.mxu0 %v178_v31 }
  0x29   :  { %180 = vmatprep.subr.bf16.mxu0 %v220_v3 }
  0x2c   :  { %182 = vmatpush1.bf16.msra.mxu0 %v181_v34 }
  0x2d   :  { %183 = vmatprep.subr.bf16.mxu0 %v220_v3 }
  0x30   :  { %185 = vmatpush1.bf16.msra.mxu0 %v184_v37 }
  0x31   :  { %186 = vmatprep.subr.bf16.mxu0 %v220_v3 }
  0x34   :  { %188 = vmatpush1.bf16.msra.mxu0 %v187_v40 }
  0x35   :  { %189 = vmatprep.subr.bf16.mxu0 %v220_v3 }
  0x38   :  { %192 = vmatpush1.bf16.msk.msra.mxu0 %vm191_vm3, %v190_v43 }
  0x3b   :  { %125 = vmatmul.mubr.f32.vlgmr.msra.gmra.mrb[0].mxu0 %v15_v44 }
 0x10e   :  { %v126_v46 = vpop.f32.mrb[0].mxu0 }
 0x10f   :  { %v127_v47 = vadd.f32 %v147_v45, %v126_v46  ;;  %v128_v48 = vpop.f32.mrb[1].mxu0 }
 0x111   :  { %v130_v49 = vmax.f32 %v127_v47, 0.0 }
 0x113   :  { %132 = vst.msk [vmem:[#allocation2] sm:$0xff] %vm131_vm4, %v130_v49 }
 0x114   :  { %207 = shalt.err (!%p204_p4)
}
 0x115   :  { %s208_s2 = scalar_lea.hbm %s365_s3, 128 }
 0x116   :  { %p209_p5 = scmp.ne.s32.totalorder %s365_s3, %s208_s2  ;;  %p212_p6 = scmp.lt.u32.totalorder %s208_s2, %s365_s3 }
 0x118   :  { %p214_p7 = pnand %p212_p6, %p209_p5 }
 0x11a   :  { %217 = shalt.err (!%p214_p7)
}
 0x11b   :  { %142 = dma.vmem_to_hbm [thread:$0]  %s140_s1, 128, %s365_s3, [#allocation3]  }
 0x11c   :  { %218 = dma.done.wait [#allocation3], 128  }
 0x11d   :  { %219 = vsyncadd [#allocation3], 4294967168 }
 0x11e   :  { %146 = vsyncpa [#allocation3], 1 }

</bundles_post_ra>
